<compile_context>
chip_gen: v6e
topology: v6e:2x2x1
jax: 0.10.0
libtpu: 0.0.40
codegen_flags: <defaults>
</compile_context>

<pallas_src>
import functools

import jax
import jax.numpy as jnp
from jax.experimental import pallas as pl
from jax.experimental.pallas import tpu as pltpu


VMEM_LIMIT_BYTES = 32 * 1024 * 1024   # explicit scoped-VMEM budget (fits v5e/v6e/v7x)


def _pick_divisor(n, target, align):
    """Largest multiple of `align` dividing n with value <= target, else None."""
    t = (min(target, n) // align) * align
    while t >= align:
        if n % t == 0:
            return t
        t -= align
    return None


def _pick_tile(n, target, align):
    """Tile size for extent n: full extent if small, else an aligned divisor."""
    if n <= target:
        return n
    d = _pick_divisor(n, target, align)
    return d if d is not None else n


# ----------------------------------------------------------------------------
# Kernel 1 (fused): embedding gather + dense layer + masked mean / cls pooling
#                   (+ L2 normalize)
#   grid = (B // tb, n_seq_tiles); seq axis is a reduction ("arbitrary"),
#   batch axis is "parallel".  The output block index ignores the seq axis, so
#   o_ref is resident in VMEM and used directly as the pooled-sum accumulator.
#   The (B, S, D) hidden state never touches HBM.
# ----------------------------------------------------------------------------
def _encode_pool_kernel(ids_ref, m_ref, emb_ref, w_ref, b_ref, o_ref, cnt_ref,
                        *, pooling, normalized, vocab_pad):
    s_idx = pl.program_id(1)
    n_s = pl.num_programs(1)

    @pl.when(s_idx == 0)
    def _init():
        o_ref[...] = jnp.zeros_like(o_ref)
        cnt_ref[...] = jnp.zeros_like(cnt_ref)

    ids = ids_ref[...]                                    # (tb, ts) int32
    tb, ts = ids.shape
    d = o_ref.shape[-1]

    # In-kernel embedding gather as a lane-dense one-hot matmul on the MXU
    # (exact: each output row copies a single bf16 table row).
    # TODO(synk): for production vocab sizes replace the resident table +
    #             one-hot matmul with a DMA row gather (scalar prefetch).
    oh = (ids[:, :, None] ==
          jax.lax.broadcasted_iota(jnp.int32, (tb, ts, vocab_pad), 2)
          ).astype(jnp.bfloat16)                          # (tb, ts, Vp)
    x = jnp.dot(oh.reshape(tb * ts, vocab_pad), emb_ref[...],
                preferred_element_type=jnp.float32).astype(jnp.bfloat16)
    # dense encoder layer: bf16 MXU operands, f32 accumulation
    h = jnp.dot(x, w_ref[...], preferred_element_type=jnp.float32)
    h = jnp.tanh(h + b_ref[...])                          # (tb*ts, D) f32
    h = h.reshape(tb, ts, d)

    if pooling == "mean":
        m = m_ref[...].astype(jnp.float32)                # (tb, ts)
        o_ref[...] += jnp.sum(h * m[:, :, None], axis=1)  # accumulate in o_ref
        cnt_ref[...] += jnp.sum(m, axis=1, keepdims=True)
    else:  # 'cls' -- seq grid is a single tile that contains token 0
        o_ref[...] = h[:, 0, :]

    @pl.when(s_idx == n_s - 1)
    def _finalize():
        reps = o_ref[...]
        if pooling == "mean":
            denom = jnp.maximum(cnt_ref[...], 1.0)        # guard all-zero masks
            reps = reps * pl.reciprocal(denom, approx=True)        # EUP
        if normalized:
            ssq = jnp.sum(reps * reps, axis=-1, keepdims=True)
            reps = reps * jax.lax.rsqrt(jnp.maximum(ssq, 1e-24))   # EUP
        o_ref[...] = reps


def encode_pool(ids, mask, emb_padded, w, b, *, pooling, normalized,
                tile_b_target=8, tile_s_target=512):
    B, S = ids.shape
    Vp, D = emb_padded.shape

    tb = _pick_tile(B, tile_b_target, 8)
    if tb == B:
        # v7x megacore: try to keep >=2 steps on the "parallel" batch axis.
        d2 = _pick_divisor(B, B // 2, 8)
        if d2 is not None:
            tb = d2

    if pooling == "cls":
        # only the seq tile containing token 0 is needed
        ts = _pick_tile(S, min(tile_s_target, 128), 128)
        n_s = 1
    else:
        ts = _pick_tile(S, tile_s_target, 128)
        n_s = S // ts

    kernel = functools.partial(_encode_pool_kernel, pooling=pooling,
                               normalized=normalized, vocab_pad=Vp)
    return pl.pallas_call(
        kernel,
        out_shape=jax.ShapeDtypeStruct((B, D), jnp.float32),
        grid_spec=pltpu.PrefetchScalarGridSpec(
            num_scalar_prefetch=0,
            grid=(B // tb, n_s),
            in_specs=[
                pl.BlockSpec((tb, ts), lambda bi, si: (bi, si)),   # input_ids
                pl.BlockSpec((tb, ts), lambda bi, si: (bi, si)),   # attention_mask
                pl.BlockSpec((Vp, D), lambda bi, si: (0, 0)),      # embed table (bf16)
                pl.BlockSpec((D, D), lambda bi, si: (0, 0)),       # dense weight (bf16)
                pl.BlockSpec((1, D), lambda bi, si: (0, 0)),       # bias (f32)
            ],
            out_specs=pl.BlockSpec((tb, D), lambda bi, si: (bi, 0)),  # resident over si
            scratch_shapes=[pltpu.VMEM((tb, 1), jnp.float32)],        # mask-count acc
        ),
        compiler_params=pltpu.CompilerParams(
            dimension_semantics=("parallel", "arbitrary"),
            vmem_limit_bytes=VMEM_LIMIT_BYTES),
    )(ids, mask, emb_padded, w, b)


# ----------------------------------------------------------------------------
# Kernel 2: similarity (q @ p^T / temperature) + in-batch cross-entropy loss.
#   grid = (Bq // tq,) ("arbitrary" -- the loss is accumulated across q tiles).
#   p_reps is consumed as (Bp, D): the MXU does the NT contraction natively,
#   so there is no wrapper-side transpose.  All softmax / loss math is f32.
# ----------------------------------------------------------------------------
def _sim_loss_kernel(q_ref, p_ref, scores_ref, loss_ref, lacc_ref,
                     *, inv_temp, group, bq_total):
    i = pl.program_id(0)

    @pl.when(i == 0)
    def _init():
        lacc_ref[...] = jnp.zeros_like(lacc_ref)

    q = q_ref[...].astype(jnp.bfloat16)                   # (tq, D)
    p = p_ref[...].astype(jnp.bfloat16)                   # (Bp, D)
    scores = jax.lax.dot_general(                         # NT matmul, f32 acc
        q, p, dimension_numbers=(((1,), (1,)), ((), ())),
        preferred_element_type=jnp.float32) * inv_temp
    scores_ref[...] = scores                              # (tq, Bp)

    tq, bp = scores.shape
    m = jnp.max(scores, axis=-1, keepdims=True)
    lse = m + jnp.log(jnp.sum(jnp.exp(scores - m), axis=-1, keepdims=True))
    row = jax.lax.broadcasted_iota(jnp.int32, (tq, bp), 0) + i * tq
    col = jax.lax.broadcasted_iota(jnp.int32, (tq, bp), 1)
    tmask = (col == row * group).astype(jnp.float32)      # one-hot in-batch targets
    tgt = jnp.sum(scores * tmask, axis=-1, keepdims=True)
    lacc_ref[...] += jnp.sum(lse - tgt, keepdims=True)    # (1, 1) partial CE sum

    @pl.when(i == pl.num_programs(0) - 1)
    def _finalize():
        loss_ref[...] = lacc_ref[...] * (1.0 / bq_total)


def similarity_and_loss(q_reps, p_reps, *, temperature, tile_q_target=256):
    bq, d = q_reps.shape
    bp, d2 = p_reps.shape
    assert d == d2
    assert bp % bq == 0, "passage batch must be a multiple of query batch"
    group = bp // bq
    tq = _pick_tile(bq, tile_q_target, 8)
    # TODO(synk): at production sizes pad Bp to a multiple of 128 (lane-dense
    #             scores stores) and emit per-q-tile partial CE sums so the q
    #             axis can be marked "parallel" for v7x megacore.
    kernel = functools.partial(_sim_loss_kernel, inv_temp=1.0 / temperature,
                               group=group, bq_total=bq)
    scores, loss = pl.pallas_call(
        kernel,
        out_shape=(
            jax.ShapeDtypeStruct((bq, bp), jnp.float32),
            jax.ShapeDtypeStruct((1, 1), jnp.float32),
        ),
        grid_spec=pltpu.PrefetchScalarGridSpec(
            num_scalar_prefetch=0,
            grid=(bq // tq,),
            in_specs=[
                pl.BlockSpec((tq, d), lambda i: (i, 0)),
                pl.BlockSpec((bp, d), lambda i: (0, 0)),
            ],
            out_specs=(
                pl.BlockSpec((tq, bp), lambda i: (i, 0)),
                pl.BlockSpec((1, 1), lambda i: (0, 0)),
            ),
            scratch_shapes=[pltpu.VMEM((1, 1), jnp.float32)],
        ),
        compiler_params=pltpu.CompilerParams(
            dimension_semantics=("arbitrary",),
            vmem_limit_bytes=VMEM_LIMIT_BYTES),
    )(q_reps, p_reps)
    return scores, loss[0, 0]


# ----------------------------------------------------------------------------
# BiEncoderModel equivalent
# ----------------------------------------------------------------------------
class BiEncoderModelPallas:
    def __init__(self, vocab_size=64, hidden=128, normlized=True,
                 sentence_pooling_method="mean", temperature=0.05,
                 key=jax.random.PRNGKey(1234)):
        self.normlized = normlized
        self.sentence_pooling_method = sentence_pooling_method
        # same reset as the torch module (inner-product similarity => T = 1)
        self.temperature = temperature if normlized else 1.0

        k_emb, k_w, k_b = jax.random.split(key, 3)
        # TODO(synk): real HF transformer backbone replaced by a synthetic
        #             bf16 embedding + one dense+tanh layer (deterministic).
        embed = (jax.random.normal(k_emb, (vocab_size, hidden), jnp.float32)
                 * 0.1).astype(jnp.bfloat16)
        # pad the vocab axis to a multiple of 128 so the in-kernel one-hot
        # gather is lane-dense (padding rows are never selected by real ids)
        v_pad = ((vocab_size + 127) // 128) * 128
        if v_pad != vocab_size:
            embed = jnp.concatenate(
                [embed, jnp.zeros((v_pad - vocab_size, hidden), embed.dtype)],
                axis=0)
        self.embed = embed                                       # (Vpad, D) bf16
        self.w = (jax.random.normal(k_w, (hidden, hidden), jnp.float32)
                  * (1.0 / hidden ** 0.5)).astype(jnp.bfloat16)  # (D, D) bf16
        self.b = jax.random.normal(k_b, (1, hidden), jnp.float32) * 0.01

    def _encode_ids(self, input_ids, attention_mask):
        return encode_pool(input_ids.astype(jnp.int32),
                           attention_mask.astype(jnp.int32),
                           self.embed, self.w, self.b,
                           pooling=self.sentence_pooling_method,
                           normalized=self.normlized)

    def encode(self, features):
        if features is None:
            return None
        return self._encode_ids(features["input_ids"], features["attention_mask"])

    def forward(self, query=None, passage=None):
        # Single fused encode over the concatenated (query | passage) batch:
        # one kernel launch, resident table/weight DMAs amortized, and a larger
        # "parallel" batch grid for the v7x megacore.
        if (query is not None and passage is not None
                and query["input_ids"].shape[1] == passage["input_ids"].shape[1]):
            bq = query["input_ids"].shape[0]
            ids = jnp.concatenate([query["input_ids"], passage["input_ids"]], axis=0)
            msk = jnp.concatenate([query["attention_mask"],
                                   passage["attention_mask"]], axis=0)
            reps = self._encode_ids(ids, msk)
            q_reps, p_reps = reps[:bq], reps[bq:]
        else:
            q_reps = self.encode(query)
            p_reps = self.encode(passage)
        # TODO(synk): negatives_cross_device all_gather omitted (single device).
        scores, loss = similarity_and_loss(q_reps, p_reps,
                                           temperature=self.temperature)
        return {"loss": loss, "scores": scores, "q_reps": q_reps, "p_reps": p_reps}


# ----------------------------------------------------------------------------
if __name__ == "__main__":
    key = jax.random.PRNGKey(0)
    k_q, k_p = jax.random.split(key, 2)

    # Bp = Bq * group_size; hidden kept lane-dense (multiple of 128)
    Bq, Bp, S, V, D = 4, 8, 16, 64, 128
    q_ids = jax.random.randint(k_q, (Bq, S), 0, V, dtype=jnp.int32)
    p_ids = jax.random.randint(k_p, (Bp, S), 0, V, dtype=jnp.int32)
    q_mask = jnp.ones((Bq, S), jnp.int32).at[1, 10:].set(0)
    p_mask = jnp.ones((Bp, S), jnp.int32).at[3, 7:].set(0)

    model = BiEncoderModelPallas(vocab_size=V, hidden=D, normlized=True,
                                 sentence_pooling_method="mean", temperature=0.05)

    out = model.forward(
        query={"input_ids": q_ids, "attention_mask": q_mask},
        passage={"input_ids": p_ids, "attention_mask": p_mask},
    )
    jax.block_until_ready(out)

    assert out["q_reps"].shape == (Bq, D)
    assert out["p_reps"].shape == (Bp, D)
    assert out["scores"].shape == (Bq, Bp)
    assert out["loss"].shape == ()
    assert bool(jnp.isfinite(out["loss"]))
    # normalized reps should be (approximately) unit L2 norm
    norms = jnp.linalg.norm(out["q_reps"], axis=-1)
    assert bool(jnp.all(jnp.abs(norms - 1.0) < 1e-2))
    print("KERNEL_OK")
</pallas_src>

<mosaic_0001>
module attributes {stable_mosaic.version = 11 : i64} {
  func.func @_encode_pool_kernel(%arg0: i32, %arg1: i32, %arg2: memref<12x16xi32, #tpu.memory_space<vmem>>, %arg3: memref<12x16xi32, #tpu.memory_space<vmem>>, %arg4: memref<128x128xbf16, #tpu.memory_space<vmem>>, %arg5: memref<128x128xbf16, #tpu.memory_space<vmem>>, %arg6: memref<1x128xf32, #tpu.memory_space<vmem>>, %arg7: memref<12x128xf32, #tpu.memory_space<vmem>>, %arg8: memref<12x1xf32, #tpu.memory_space<vmem>>) attributes {dimension_semantics = [#tpu.dimension_semantics<parallel>, #tpu.dimension_semantics<arbitrary>], iteration_bounds = array<i64: 1, 1>, scalar_prefetch = 0 : i64, scratch_operands = 1 : i64, tpu.core_type = #tpu.core_type<tc>, window_params = [{transform_indices = @transform_0, window_bounds = array<i64: 12, 16>}, {transform_indices = @transform_1, window_bounds = array<i64: 12, 16>}, {pipeline_mode = #tpu.pipeline_mode<synchronous>, transform_indices = @transform_2, window_bounds = array<i64: 128, 128>}, {pipeline_mode = #tpu.pipeline_mode<synchronous>, transform_indices = @transform_3, window_bounds = array<i64: 128, 128>}, {pipeline_mode = #tpu.pipeline_mode<synchronous>, transform_indices = @transform_4, window_bounds = array<i64: 1, 128>}, {transform_indices = @transform_5, window_bounds = array<i64: 12, 128>}]} {
    %c0_i32 = arith.constant 0 : i32
    %0 = arith.cmpi eq, %arg1, %c0_i32 : i32
    %1 = arith.extui %0 : i1 to i32
    %c0_i32_0 = arith.constant 0 : i32
    %2 = arith.cmpi ne, %1, %c0_i32_0 : i32
    scf.if %2 {
      %cst_23 = arith.constant 0.000000e+00 : f32
      %39 = vector.broadcast %cst_23 : f32 to vector<12x128xf32>
      %c0_24 = arith.constant 0 : index
      %c0_25 = arith.constant 0 : index
      %40 = vector.load %arg7[%c0_24, %c0_25] : memref<12x128xf32, #tpu.memory_space<vmem>>, vector<12x128xf32>
      tpu.vector_store %arg7[%c0_24, %c0_25], %39 {strides = array<i32>} : memref<12x128xf32, #tpu.memory_space<vmem>>, vector<12x128xf32>,
      %cst_26 = arith.constant 0.000000e+00 : f32
      %41 = vector.broadcast %cst_26 : f32 to vector<12x1xf32>
      %c0_27 = arith.constant 0 : index
      %c0_28 = arith.constant 0 : index
      %42 = vector.load %arg8[%c0_27, %c0_28] : memref<12x1xf32, #tpu.memory_space<vmem>>, vector<12x1xf32>
      tpu.vector_store %arg8[%c0_27, %c0_28], %41 {strides = array<i32>} : memref<12x1xf32, #tpu.memory_space<vmem>>, vector<12x1xf32>,
    } else {
    }
    %c0 = arith.constant 0 : index
    %c0_1 = arith.constant 0 : index
    %3 = vector.load %arg2[%c0, %c0_1] : memref<12x16xi32, #tpu.memory_space<vmem>>, vector<12x16xi32>
    %4 = vector.shape_cast %3 : vector<12x16xi32> to vector<12x16x1xi32>
    %5 = tpu.iota {dimensions = array<i32: 2>} : vector<12x16x128xi32>
    %6 = vector.broadcast %4 : vector<12x16x1xi32> to vector<12x16x128xi32>
    %7 = arith.cmpi eq, %6, %5 : vector<12x16x128xi32>
    %8 = arith.extui %7 : vector<12x16x128xi1> to vector<12x16x128xi32>
    %9 = arith.sitofp %8 : vector<12x16x128xi32> to vector<12x16x128xf32>
    %10 = arith.truncf %9 : vector<12x16x128xf32> to vector<12x16x128xbf16>
    %11 = vector.shape_cast %10 : vector<12x16x128xbf16> to vector<192x128xbf16>
    %c0_2 = arith.constant 0 : index
    %c0_3 = arith.constant 0 : index
    %12 = vector.load %arg4[%c0_2, %c0_3] : memref<128x128xbf16, #tpu.memory_space<vmem>>, vector<128x128xbf16>
    %cst = arith.constant dense<0.000000e+00> : vector<192x128xf32>
    %13 = tpu.matmul %11, %12, %cst {dimension_numbers = #tpu.dot_dimension_numbers<[1], [0], [0], [1], [0, 0, 1, 1], [], []>} : vector<192x128xbf16>, vector<128x128xbf16>, vector<192x128xf32> -> vector<192x128xf32>
    %14 = arith.truncf %13 : vector<192x128xf32> to vector<192x128xbf16>
    %c0_4 = arith.constant 0 : index
    %c0_5 = arith.constant 0 : index
    %15 = vector.load %arg5[%c0_4, %c0_5] : memref<128x128xbf16, #tpu.memory_space<vmem>>, vector<128x128xbf16>
    %cst_6 = arith.constant dense<0.000000e+00> : vector<192x128xf32>
    %16 = tpu.matmul %14, %15, %cst_6 {dimension_numbers = #tpu.dot_dimension_numbers<[1], [0], [0], [1], [0, 0, 1, 1], [], []>} : vector<192x128xbf16>, vector<128x128xbf16>, vector<192x128xf32> -> vector<192x128xf32>
    %c0_7 = arith.constant 0 : index
    %c0_8 = arith.constant 0 : index
    %17 = vector.load %arg6[%c0_7, %c0_8] : memref<1x128xf32, #tpu.memory_space<vmem>>, vector<1x128xf32>
    %18 = vector.broadcast %17 : vector<1x128xf32> to vector<192x128xf32>
    %19 = arith.addf %16, %18 : vector<192x128xf32>
    %20 = math.tanh %19 : vector<192x128xf32>
    %21 = vector.shape_cast %20 : vector<192x128xf32> to vector<12x16x128xf32>
    %c0_9 = arith.constant 0 : index
    %c0_10 = arith.constant 0 : index
    %22 = vector.load %arg3[%c0_9, %c0_10] : memref<12x16xi32, #tpu.memory_space<vmem>>, vector<12x16xi32>
    %23 = arith.sitofp %22 : vector<12x16xi32> to vector<12x16xf32>
    %c0_11 = arith.constant 0 : index
    %c0_12 = arith.constant 0 : index
    %24 = vector.load %arg7[%c0_11, %c0_12] : memref<12x128xf32, #tpu.memory_space<vmem>>, vector<12x128xf32>
    %25 = vector.shape_cast %23 : vector<12x16xf32> to vector<12x16x1xf32>
    %26 = vector.broadcast %25 : vector<12x16x1xf32> to vector<12x16x128xf32>
    %27 = arith.mulf %21, %26 : vector<12x16x128xf32>
    %cst_13 = arith.constant dense<0.000000e+00> : vector<12x128xf32>
    %28 = vector.multi_reduction <add>, %27, %cst_13 [1] : vector<12x16x128xf32> to vector<12x128xf32>
    %29 = arith.addf %24, %28 : vector<12x128xf32>
    %c0_14 = arith.constant 0 : index
    %c0_15 = arith.constant 0 : index
    %30 = vector.load %arg7[%c0_14, %c0_15] : memref<12x128xf32, #tpu.memory_space<vmem>>, vector<12x128xf32>
    tpu.vector_store %arg7[%c0_14, %c0_15], %29 {strides = array<i32>} : memref<12x128xf32, #tpu.memory_space<vmem>>, vector<12x128xf32>,
    %c0_16 = arith.constant 0 : index
    %c0_17 = arith.constant 0 : index
    %31 = vector.load %arg8[%c0_16, %c0_17] : memref<12x1xf32, #tpu.memory_space<vmem>>, vector<12x1xf32>
    %cst_18 = arith.constant dense<0.000000e+00> : vector<12xf32>
    %32 = vector.multi_reduction <add>, %23, %cst_18 [1] : vector<12x16xf32> to vector<12xf32>
    %33 = vector.shape_cast %32 : vector<12xf32> to vector<12x1xf32>
    %34 = arith.addf %31, %33 : vector<12x1xf32>
    %c0_19 = arith.constant 0 : index
    %c0_20 = arith.constant 0 : index
    %35 = vector.load %arg8[%c0_19, %c0_20] : memref<12x1xf32, #tpu.memory_space<vmem>>, vector<12x1xf32>
    tpu.vector_store %arg8[%c0_19, %c0_20], %34 {strides = array<i32>} : memref<12x1xf32, #tpu.memory_space<vmem>>, vector<12x1xf32>,
    %c0_i32_21 = arith.constant 0 : i32
    %36 = arith.cmpi eq, %arg1, %c0_i32_21 : i32
    %37 = arith.extui %36 : i1 to i32
    %c0_i32_22 = arith.constant 0 : i32
    %38 = arith.cmpi ne, %37, %c0_i32_22 : i32
    scf.if %38 {
      %c0_23 = arith.constant 0 : index
      %c0_24 = arith.constant 0 : index
      %39 = vector.load %arg7[%c0_23, %c0_24] : memref<12x128xf32, #tpu.memory_space<vmem>>, vector<12x128xf32>
      %c0_25 = arith.constant 0 : index
      %c0_26 = arith.constant 0 : index
      %40 = vector.load %arg8[%c0_25, %c0_26] : memref<12x1xf32, #tpu.memory_space<vmem>>, vector<12x1xf32>
      %cst_27 = arith.constant 1.000000e+00 : f32
      %41 = vector.broadcast %cst_27 : f32 to vector<12x1xf32>
      %42 = arith.maximumf %40, %41 : vector<12x1xf32>
      %43 = tpu.reciprocal %42 {approx = true} : vector<12x1xf32> -> vector<12x1xf32>
      %44 = vector.broadcast %43 : vector<12x1xf32> to vector<12x128xf32>
      %45 = arith.mulf %39, %44 : vector<12x128xf32>
      %46 = arith.mulf %45, %45 : vector<12x128xf32>
      %cst_28 = arith.constant dense<0.000000e+00> : vector<12xf32>
      %47 = vector.multi_reduction <add>, %46, %cst_28 [1] : vector<12x128xf32> to vector<12xf32>
      %48 = vector.shape_cast %47 : vector<12xf32> to vector<12x1xf32>
      %cst_29 = arith.constant 1.000000e-24 : f32
      %49 = vector.broadcast %cst_29 : f32 to vector<12x1xf32>
      %50 = arith.maximumf %48, %49 : vector<12x1xf32>
      %51 = math.rsqrt %50 : vector<12x1xf32>
      %52 = vector.broadcast %51 : vector<12x1xf32> to vector<12x128xf32>
      %53 = arith.mulf %45, %52 : vector<12x128xf32>
      %c0_30 = arith.constant 0 : index
      %c0_31 = arith.constant 0 : index
      %54 = vector.load %arg7[%c0_30, %c0_31] : memref<12x128xf32, #tpu.memory_space<vmem>>, vector<12x128xf32>
      tpu.vector_store %arg7[%c0_30, %c0_31], %53 {strides = array<i32>} : memref<12x128xf32, #tpu.memory_space<vmem>>, vector<12x128xf32>,
    } else {
    }
    return
  }
  func.func @transform_0(%arg0: i32, %arg1: i32) -> (i32, i32) {
    %c0_i32 = arith.constant 0 : i32
    return %arg0, %arg1 : i32, i32
  }
  func.func @transform_1(%arg0: i32, %arg1: i32) -> (i32, i32) {
    %c0_i32 = arith.constant 0 : i32
    return %arg0, %arg1 : i32, i32
  }
  func.func @transform_2(%arg0: i32, %arg1: i32) -> (i32, i32) {
    %c0_i32 = arith.constant 0 : i32
    %c0_i32_0 = arith.constant 0 : i32
    %c0_i32_1 = arith.constant 0 : i32
    return %c0_i32, %c0_i32_0 : i32, i32
  }
  func.func @transform_3(%arg0: i32, %arg1: i32) -> (i32, i32) {
    %c0_i32 = arith.constant 0 : i32
    %c0_i32_0 = arith.constant 0 : i32
    %c0_i32_1 = arith.constant 0 : i32
    return %c0_i32, %c0_i32_0 : i32, i32
  }
  func.func @transform_4(%arg0: i32, %arg1: i32) -> (i32, i32) {
    %c0_i32 = arith.constant 0 : i32
    %c0_i32_0 = arith.constant 0 : i32
    %c0_i32_1 = arith.constant 0 : i32
    return %c0_i32, %c0_i32_0 : i32, i32
  }
  func.func @transform_5(%arg0: i32, %arg1: i32) -> (i32, i32) {
    %c0_i32 = arith.constant 0 : i32
    %c0_i32_0 = arith.constant 0 : i32
    return %arg0, %c0_i32 : i32, i32
  }
}

</mosaic_0001>

<bundles_post_ra>
// kernel: tpu_custom_call.1
= control target key start
LH: loop header
LB: loop body
LE: loop exit
PB: predicated region body
PF: predicated region fallthrough
CT: control target
= control target key end

     0   :  { %10 = vsyncpa [#allocation4], 0  ;;  %s1713_s0 = inlined_call_operand.hbm [shape: s32[12,16], index: 0, kind: input, shape index: {}]   ;;  %s1714_s1 = inlined_call_operand.hbm [shape: s32[12,16], index: 1, kind: input, shape index: {}]   ;;  %s1715_s2 = inlined_call_operand.hbm [shape: bf16[128,128], index: 2, kind: input, shape index: {}]   ;;  %s1716_s3 = inlined_call_operand.hbm [shape: bf16[128,128], index: 3, kind: input, shape index: {}]   ;;  %s1717_s4 = inlined_call_operand.vmem [shape: f32[1,128], index: 4, kind: input, shape index: {}]   ;;  %s1718_s5 = inlined_call_operand.hbm [shape: f32[12,128], index: 5, kind: output, shape index: {}]  }
   0x1   :  { %11 = vsyncpa [#allocation7], 0 }
   0x2   :  { %12 = vsyncpa [#allocation10], 0 }
   0x3   :  { %13 = vsyncpa [#allocation5], 0  ;;  %s1470_s18 = smov [#allocation6]   ;;  %s1471_s20 = smov [#allocation3]  }
   0x4   :  { %s31_s19 = sshll.u32 %s1470_s18, 4  ;;  %s19_s21 = sshll.u32 %s1471_s20, 4  ;;  %s32_s19 = int_to_ptr.vmem [resolvable:$true] %s31_s19  ;;  %s20_s21 = int_to_ptr.vmem [resolvable:$true] %s19_s21 }
   0x5   :  { %s1370_s22 = scalar_lea.vmem %s32_s19, 256  ;;  %p1375_p1 = scmp.lt.s32.totalorder %s32_s19, %s32_s19 }
   0x6   :  { %p1371_p0 = scmp.ne.s32.totalorder %s32_s19, %s1370_s22  ;;  %p1376_p2 = scmp.lt.s32.totalorder %s1370_s22, %s1370_s22 }
   0x8   :  { %p1377_p3 = por %p1376_p2, %p1375_p1 }
   0xa   :  { %p1378_p4 = pnand %p1377_p3, %p1371_p0 }
   0xc   :  { %1381 = shalt.err (!%p1378_p4)
}
   0xd   :  { %s1472_s23 = smov 128   ;;  %s1473_s24 = smov 8  }
   0xe   :  { %37 = dma.hbm_to_vmem [thread:$0]  %s1714_s1, 256, %s32_s19, [#allocation7], %s1472_s23, %s1472_s23, %s1473_s24  }
   0xf   :  { %s1390_s27 = scalar_lea.vmem %s20_s21, 256  ;;  %p1395_p6 = scmp.lt.s32.totalorder %s20_s21, %s20_s21 }
  0x10   :  { %p1391_p5 = scmp.ne.s32.totalorder %s20_s21, %s1390_s27  ;;  %p1396_p7 = scmp.lt.s32.totalorder %s1390_s27, %s1390_s27 }
  0x12   :  { %p1397_p8 = por %p1396_p7, %p1395_p6 }
  0x14   :  { %p1398_p9 = pnand %p1397_p8, %p1391_p5 }
  0x16   :  { %1401 = shalt.err (!%p1398_p9)
}
  0x17   :  { %25 = dma.hbm_to_vmem [thread:$0]  %s1713_s0, 256, %s20_s21, [#allocation4], %s1472_s23, %s1472_s23, %s1473_s24  }
  0x18   :  { %s1474_s30 = smov [#allocation8]  }
  0x19   :  { %s43_s6 = sshll.u32 %s1474_s30, 4  ;;  %s44_s6 = int_to_ptr.vmem [resolvable:$true] %s43_s6 }
  0x1a   :  { %s1410_s7 = scalar_lea.vmem %s44_s6, 1024  ;;  %p1415_p11 = scmp.lt.s32.totalorder %s44_s6, %s44_s6 }
  0x1b   :  { %p1411_p10 = scmp.ne.s32.totalorder %s44_s6, %s1410_s7  ;;  %p1416_p12 = scmp.lt.s32.totalorder %s1410_s7, %s1410_s7 }
  0x1d   :  { %p1417_p13 = por %p1416_p12, %p1415_p11 }
  0x1f   :  { %p1418_p0 = pnand %p1417_p13, %p1411_p10 }
  0x21   :  { %1421 = shalt.err (!%p1418_p0)
}
  0x22   :  { %s1475_s1 = smov 64   ;;  %s1476_s8 = smov 4  }
  0x23   :  { %49 = dma.hbm_to_vmem [thread:$0]  %s1715_s2, 1024, %s44_s6, [#allocation7], %s1475_s1, %s1475_s1, %s1476_s8  }
  0x24   :  { %s1477_s11 = smov [#allocation9]  }
  0x25   :  { %s55_s12 = sshll.u32 %s1477_s11, 4  ;;  %s56_s12 = int_to_ptr.vmem [resolvable:$true] %s55_s12 }
  0x26   :  { %s1430_s0 = scalar_lea.vmem %s56_s12, 1024  ;;  %p1435_p2 = scmp.lt.s32.totalorder %s56_s12, %s56_s12 }
  0x27   :  { %p1431_p1 = scmp.ne.s32.totalorder %s56_s12, %s1430_s0  ;;  %p1436_p3 = scmp.lt.s32.totalorder %s1430_s0, %s1430_s0 }
  0x29   :  { %p1437_p4 = por %p1436_p3, %p1435_p2 }
  0x2b   :  { %p1438_p5 = pnand %p1437_p4, %p1431_p1 }
  0x2d   :  { %1441 = shalt.err (!%p1438_p5)
}
  0x2e   :  { %61 = dma.hbm_to_vmem [thread:$0]  %s1716_s3, 1024, %s56_s12, [#allocation10], %s1475_s1, %s1475_s1, %s1476_s8  }
  0x2f   :  { %1462 = dma.done.wait [#allocation4], 256  }
  0x30   :  { %1463 = vsyncadd [#allocation4], 4294967040 }
  0x31   :  { %1464 = dma.done.wait [#allocation7], 1280  }
  0x32   :  { %1465 = vsyncadd [#allocation7], 4294966016 }
  0x33   :  { %1466 = dma.done.wait [#allocation10], 1024  }
  0x34   :  { %1467 = vsyncadd [#allocation10], 4294966272  ;;  %v89_v0 = vlaneseq  ;;  %v87_v4 = vld [vmem:[#allocation3] sm:$0xff]  ;;  %v1290_v7 = vld [vmem:[#allocation8 + $0x38] sm:$0xff]   ;;  %vm1019_vm0 = vcmask 130048  }
  0x35   :  { %v1291_v8 = vld [vmem:[#allocation8 + $0x30] sm:$0xff]   ;;  %1196 = vmatprep.subr.bf16.mxu0 %v1290_v7  ;;  %v1292_v10 = vld [vmem:[#allocation8 + $0x28] sm:$0xff]   ;;  %v1293_v14 = vld [vmem:[#allocation8 + $0x20] sm:$0xff]   ;;  %v1478_v46 = vmov 1.0|1.0  }
  0x36   :  { %v1531_v1 = vshrl.u32 %v89_v0, 7  ;;  %1197 = vmatpush3.bf16.msra.mxu0 %v1290_v7  ;;  %v1294_v16 = vld [vmem:[#allocation8 + $0x18] sm:$0xff]   ;;  %v1295_v19 = vld [vmem:[#allocation8 + $0x10] sm:$0xff]   ;;  %v1296_v22 = vld [vmem:[#allocation8 + $0x8] sm:$0xff]   ;;  %v1569_v43 = vand.u32 127, %v89_v0 }
  0x37   :  { %1198 = vmatprep.subr.bf16.mxu0 %v1291_v8  ;;  %v1297_v25 = vld [vmem:[#allocation8] sm:$0xff]   ;;  %v88_v27 = vld [vmem:[#allocation3 + $0x8] sm:$0xf]  ;;  %v1298_v30 = vld [vmem:[#allocation9 + $0x38] sm:$0xff]  }
  0x38   :  { %v1534_v2 = vsub.s32 1, %v1531_v1  ;;  %v1537_v3 = vsub.s32 0, %v1531_v1  ;;  %v1542_v9 = vsub.s32 2, %v1531_v1  ;;  %v1546_v12 = vsub.s32 3, %v1531_v1  ;;  %v1299_v31 = vld [vmem:[#allocation9 + $0x30] sm:$0xff]   ;;  %1236 = vmatprep.subr.bf16.mxu1 %v1298_v30  ;;  %v1300_v33 = vld [vmem:[#allocation9 + $0x28] sm:$0xff]  }
  0x39   :  { %v135_v13 = vsub.s32 4, %v1531_v1  ;;  %v146_v18 = vsub.s32 5, %v1531_v1  ;;  %v157_v21 = vsub.s32 6, %v1531_v1  ;;  %v168_v24 = vsub.s32 7, %v1531_v1  ;;  %1237 = vmatpush3.bf16.msra.mxu1 %v1298_v30  ;;  %v1301_v35 = vld [vmem:[#allocation9 + $0x20] sm:$0xff]   ;;  %v1302_v36 = vld [vmem:[#allocation9 + $0x18] sm:$0xff]  }
  0x3a   :  { %v103_v5 = vrot.slane %v87_v4, %v1534_v2  ;;  %v92_v6 = vrot.slane %v87_v4, %v1537_v3  ;;  %v114_v11 = vrot.slane %v87_v4, %v1542_v9  ;;  %1199 = vmatpush3.bf16.msra.mxu0 %v1291_v8  ;;  %v125_v15 = vrot.slane %v87_v4, %v1546_v12  ;;  %v1303_v37 = vld [vmem:[#allocation9 + $0x10] sm:$0xff]   ;;  %v737_v7 = vld [vmem:[#allocation6 + $0x8] sm:$0xf] }
  0x3b   :  { %1200 = vmatprep.subr.bf16.mxu0 %v1292_v10  ;;  %v136_v17 = vrot.slane %v87_v4, %v135_v13  ;;  %v147_v20 = vrot.slane %v87_v4, %v146_v18  ;;  %v158_v23 = vrot.slane %v87_v4, %v157_v21  ;;  %v169_v26 = vrot.slane %v87_v4, %v168_v24  ;;  %v736_v38 = vld [vmem:[#allocation6] sm:$0xff] }
  0x3c   :  { %105 = vbcast.lane.b32.xlu1 %v103_v5, 256  ;;  %94 = vbcast.lane.b32.xlu0 %v92_v6, 256  ;;  %v180_v28 = vrot.slane %v88_v27, %v1537_v3  ;;  %v191_v29 = vrot.slane %v88_v27, %v1534_v2  ;;  %v202_v32 = vrot.slane %v88_v27, %v1542_v9  ;;  %v1565_v39 = vcvt.s32.f32 %v736_v38 }
  0x3d   :  { %1238 = vmatprep.subr.bf16.mxu1 %v1299_v31  ;;  %v213_v34 = vrot.slane %v88_v27, %v1546_v12  ;;  %v739_v8 = vcvt.s32.f32 %v737_v7 }
  0x3e   :  { %1201 = vmatpush3.bf16.msra.mxu0 %v1292_v10  ;;  %1239 = vmatpush3.bf16.msra.mxu1 %v1299_v31  ;;  %v1020_v40 = vsel %vm1019_vm0, %v1565_v39, 0.0 }
  0x3f   :  { %1202 = vmatprep.subr.bf16.mxu0 %v1293_v14  ;;  %1240 = vmatprep.subr.bf16.mxu1 %v1300_v33  ;;  %v833_v27 = vrot.slane %v739_v8, %v1537_v3 }
  0x40   :  { %109 = vbcast.lane.b32.xlu1 %v103_v5, 264  ;;  %98 = vbcast.lane.b32.xlu0 %v92_v6, 264  ;;  %v1304_v6 = vld [vmem:[#allocation9 + $0x8] sm:$0xff]  }
  0x42   :  { %1203 = vmatpush3.bf16.msra.mxu0 %v1293_v14  ;;  %1241 = vmatpush3.bf16.msra.mxu1 %v1300_v33  ;;  %v745_v14 = vrot.slane %v1565_v39, %v1537_v3  ;;  %v811_v3 = vrot.slane %v1565_v39, %v157_v21 }
  0x43   :  { %1204 = vmatprep.subr.bf16.mxu0 %v1294_v16  ;;  %1242 = vmatprep.subr.bf16.mxu1 %v1301_v35 }
  0x44   :  { %120 = vbcast.lane.b32.xlu1 %v114_v11, 264  ;;  %116 = vbcast.lane.b32.xlu0 %v114_v11, 256  ;;  %v1305_v11 = vld [vmem:[#allocation9] sm:$0xff]  }
  0x46   :  { %1205 = vmatpush3.bf16.msra.mxu0 %v1294_v16  ;;  %1243 = vmatpush3.bf16.msra.mxu1 %v1301_v35  ;;  %v1479_v16 = vmov 0.0  }
  0x47   :  { %1206 = vmatprep.subr.bf16.mxu0 %v1295_v19  ;;  %1244 = vmatprep.subr.bf16.mxu1 %v1302_v36  ;;  %82 = vst [vmem:[#allocation11 + $0x8] sm:$0xf] %v1479_v16 }
  0x48   :  { %131 = vbcast.lane.b32.xlu1 %v125_v15, 264  ;;  %127 = vbcast.lane.b32.xlu0 %v125_v15, 256  ;;  %v756_v15 = vrot.slane %v1565_v39, %v1534_v2 }
  0x4a   :  { %1207 = vmatpush3.bf16.msra.mxu0 %v1295_v19  ;;  %1245 = vmatpush3.bf16.msra.mxu1 %v1302_v36  ;;  %v767_v19 = vrot.slane %v1565_v39, %v1542_v9 }
  0x4b   :  { %1208 = vmatprep.subr.bf16.mxu0 %v1296_v22  ;;  %1246 = vmatprep.subr.bf16.mxu1 %v1303_v37 }
  0x4c   :  { %142 = vbcast.lane.b32.xlu1 %v136_v17, 264  ;;  %138 = vbcast.lane.b32.xlu0 %v136_v17, 256  ;;  %v1480_v17 = vmov 0  }
  0x4d   :  { %1289 = vset.pattern.permute.xlu1 %v1480_v17  ;;  %1288 = vset.pattern.permute.xlu0 %v1480_v17 }
  0x4e   :  { %1209 = vmatpush3.bf16.msra.mxu0 %v1296_v22  ;;  %1247 = vmatpush3.bf16.msra.mxu1 %v1303_v37  ;;  %v778_v22 = vrot.slane %v1565_v39, %v1546_v12 }
  0x4f   :  { %1210 = vmatprep.subr.bf16.mxu0 %v1297_v25  ;;  %1248 = vmatprep.subr.bf16.mxu1 %v1304_v6 }
  0x50   :  { %153 = vbcast.lane.b32.xlu1 %v147_v20, 264  ;;  %149 = vbcast.lane.b32.xlu0 %v147_v20, 256 }
  0x52   :  { %1211 = vmatpush3.bf16.msra.mxu0 %v1297_v25  ;;  %1249 = vmatpush3.bf16.msra.mxu1 %v1304_v6 }
  0x53   :  { %1250 = vmatprep.subr.bf16.mxu1 %v1305_v11 }
  0x54   :  { %164 = vbcast.lane.b32.xlu1 %v158_v23, 264  ;;  %160 = vbcast.lane.b32.xlu0 %v158_v23, 256 }
  0x56   :  { %1251 = vmatpush3.bf16.msra.mxu1 %v1305_v11 }
  0x58   :  { %175 = vbcast.lane.b32.xlu1 %v169_v26, 264  ;;  %171 = vbcast.lane.b32.xlu0 %v169_v26, 256  ;;  %v789_v26 = vrot.slane %v1565_v39, %v135_v13  ;;  %v855_v13 = vrot.slane %v739_v8, %v1542_v9 }
  0x5c   :  { %186 = vbcast.lane.b32.xlu1 %v180_v28, 264  ;;  %182 = vbcast.lane.b32.xlu0 %v180_v28, 256  ;;  %v844_v28 = vrot.slane %v739_v8, %v1534_v2  ;;  %v866_v2 = vrot.slane %v739_v8, %v1546_v12 }
  0x60   :  { %197 = vbcast.lane.b32.xlu1 %v191_v29, 264  ;;  %193 = vbcast.lane.b32.xlu0 %v191_v29, 256  ;;  %v800_v29 = vrot.slane %v1565_v39, %v146_v18  ;;  %v822_v18 = vrot.slane %v1565_v39, %v168_v24 }
  0x64   :  { %208 = vbcast.lane.b32.xlu1 %v202_v32, 264  ;;  %204 = vbcast.lane.b32.xlu0 %v202_v32, 256 }
  0x68   :  { %219 = vbcast.lane.b32.xlu1 %v213_v34, 264  ;;  %215 = vbcast.lane.b32.xlu0 %v213_v34, 256 }
  0x8c   :  { %1021 = vadd.xlane.f32.xlu1 %v1020_v40 }
  0x9d   :  { %751 = vbcast.lane.b32.xlu1 %v745_v14, 264 }
  0xa1   :  { %762 = vbcast.lane.b32.xlu1 %v756_v15, 264 }
  0xa5   :  { %773 = vbcast.lane.b32.xlu1 %v767_v19, 264 }
  0xa9   :  { %784 = vbcast.lane.b32.xlu1 %v778_v22, 264 }
  0xad   :  { %795 = vbcast.lane.b32.xlu1 %v789_v26, 264 }
  0xae   :  { %v106_v41 = vpop.permute.xlu1 %105  ;;  %v95_v42 = vpop.permute.xlu0 %94 }
  0xaf   :  { %vm225_vm1 = vcmp.eq.s32.totalorder %v106_v41, %v1569_v43  ;;  %vm223_vm4 = vcmp.eq.s32.totalorder %v95_v42, %v1569_v43 }
  0xb1   :  { %839 = vbcast.lane.b32.xlu1 %v833_v27, 264 }
  0xb2   :  { %v110_v44 = vpop.permute.xlu1 %109  ;;  %v99_v45 = vpop.permute.xlu0 %98 }
  0xb3   :  { %vm226_vm2 = vcmp.eq.s32.totalorder %v110_v44, %v1569_v43  ;;  %vm224_vm3 = vcmp.eq.s32.totalorder %v99_v45, %v1569_v43 }
  0xb4   :  { %vm1125_vm5 = vmpackc.low %vm226_vm2, %vm225_vm1 }
  0xb5   :  { %vm1123_vm6 = vmpackc.low %vm224_vm3, %vm223_vm4  ;;  %850 = vbcast.lane.b32.xlu1 %v844_v28, 264 }
  0xb6   :  { %1212 = vmatprep.mubr.msk.bf16.mxu0 %vm1123_vm6, %v1478_v46  ;;  %v121_v47 = vpop.permute.xlu1 %120  ;;  %v117_v48 = vpop.permute.xlu0 %116 }
  0xb7   :  { %1213 = vmatmul.mubr.msk.bf16.vlgmr.msra.gmra.mxu0 %vm1125_vm5, %v1478_v46  ;;  %vm228_vm7 = vcmp.eq.s32.totalorder %v121_v47, %v1569_v43  ;;  %vm227_vm8 = vcmp.eq.s32.totalorder %v117_v48, %v1569_v43 }
  0xb8   :  { %vm1127_vm9 = vmpackc.low %vm228_vm7, %vm227_vm8 }
  0xb9   :  { %1216 = vmatprep.mubr.msk.bf16.mxu0 %vm1127_vm9, %v1478_v46  ;;  %806 = vbcast.lane.b32.xlu1 %v800_v29, 264 }
  0xba   :  { %v132_v49 = vpop.permute.xlu1 %131  ;;  %v128_v50 = vpop.permute.xlu0 %127 }
  0xbb   :  { %vm230_vm10 = vcmp.eq.s32.totalorder %v132_v49, %v1569_v43  ;;  %vm229_vm11 = vcmp.eq.s32.totalorder %v128_v50, %v1569_v43 }
  0xbc   :  { %vm1129_vm12 = vmpackc.low %vm230_vm10, %vm229_vm11 }
  0xbd   :  { %861 = vbcast.lane.b32.xlu1 %v855_v13, 264 }
  0xbe   :  { %v143_v51 = vpop.permute.xlu1 %142  ;;  %v139_v52 = vpop.permute.xlu0 %138 }
  0xbf   :  { %1217 = vmatmul.mubr.msk.bf16.gmra.mxu0 %vm1129_vm12, %v1478_v46  ;;  %vm232_vm13 = vcmp.eq.s32.totalorder %v143_v51, %v1569_v43  ;;  %vm231_vm14 = vcmp.eq.s32.totalorder %v139_v52, %v1569_v43 }
  0xc0   :  { %vm1131_vm15 = vmpackc.low %vm232_vm13, %vm231_vm14 }
  0xc1   :  { %1220 = vmatprep.mubr.msk.bf16.mxu0 %vm1131_vm15, %v1478_v46  ;;  %817 = vbcast.lane.b32.xlu1 %v811_v3, 264 }
  0xc2   :  { %v154_v53 = vpop.permute.xlu1 %153  ;;  %v150_v54 = vpop.permute.xlu0 %149 }
  0xc3   :  { %vm234_vm0 = vcmp.eq.s32.totalorder %v154_v53, %v1569_v43  ;;  %vm233_vm1 = vcmp.eq.s32.totalorder %v150_v54, %v1569_v43 }
  0xc4   :  { %vm1133_vm2 = vmpackc.low %vm234_vm0, %vm233_vm1 }
  0xc5   :  { %872 = vbcast.lane.b32.xlu1 %v866_v2, 264 }
  0xc6   :  { %v165_v55 = vpop.permute.xlu1 %164  ;;  %v161_v56 = vpop.permute.xlu0 %160 }
  0xc7   :  { %1221 = vmatmul.mubr.msk.bf16.gmra.mxu0 %vm1133_vm2, %v1478_v46  ;;  %vm236_vm3 = vcmp.eq.s32.totalorder %v165_v55, %v1569_v43  ;;  %vm235_vm4 = vcmp.eq.s32.totalorder %v161_v56, %v1569_v43 }
  0xc8   :  { %vm1135_vm5 = vmpackc.low %vm236_vm3, %vm235_vm4 }
  0xc9   :  { %1224 = vmatprep.mubr.msk.bf16.mxu0 %vm1135_vm5, %v1478_v46  ;;  %vm1023_vm5 = vcmask 125952   ;;  %828 = vbcast.lane.b32.xlu1 %v822_v18, 264 }
  0xca   :  { %v176_v57 = vpop.permute.xlu1 %175  ;;  %v172_v58 = vpop.permute.xlu0 %171  ;;  %v1024_v10 = vsel %vm1023_vm5, %v739_v8, 0.0 }
  0xcb   :  { %vm238_vm6 = vcmp.eq.s32.totalorder %v176_v57, %v1569_v43  ;;  %vm237_vm7 = vcmp.eq.s32.totalorder %v172_v58, %v1569_v43  ;;  %1025 = vadd.xlane.f32.xlu0 %v1024_v10 }
  0xcc   :  { %vm1137_vm8 = vmpackc.low %vm238_vm6, %vm237_vm7  ;;  %vm83_vm6 = vcmask 7168   ;;  %vm85_vm7 = vcmask 3072  }
  0xcd   :  { %84 = vst.msk [vmem:[#allocation2] sm:$0xff] %vm83_vm6, %v1479_v16 }
  0xce   :  { %v187_v59 = vpop.permute.xlu1 %186  ;;  %v183_v60 = vpop.permute.xlu0 %182  ;;  %86 = vst.msk [vmem:[#allocation2 + $0x8] sm:$0xf] %vm85_vm7, %v1479_v16 }
  0xcf   :  { %1225 = vmatmul.mubr.msk.bf16.gmra.mxu0 %vm1137_vm8, %v1478_v46  ;;  %vm240_vm9 = vcmp.eq.s32.totalorder %v187_v59, %v1569_v43  ;;  %vm239_vm10 = vcmp.eq.s32.totalorder %v183_v60, %v1569_v43  ;;  %vm994_vm8 = vcmask 1041409  }
  0xd0   :  { %vm1139_vm11 = vmpackc.low %vm240_vm9, %vm239_vm10  ;;  %vm996_vm9 = vcmask 1042434   ;;  %vm998_vm10 = vcmask 1043459  }
  0xd1   :  { %1228 = vmatprep.mubr.msk.bf16.mxu0 %vm1139_vm11, %v1478_v46  ;;  %vm1000_vm11 = vcmask 1044484  }
  0xd2   :  { %v198_v61 = vpop.permute.xlu1 %197  ;;  %v194_v62 = vpop.permute.xlu0 %193 }
  0xd3   :  { %vm242_vm12 = vcmp.eq.s32.totalorder %v198_v61, %v1569_v43  ;;  %vm241_vm13 = vcmp.eq.s32.totalorder %v194_v62, %v1569_v43 }
  0xd4   :  { %vm1141_vm14 = vmpackc.low %vm242_vm12, %vm241_vm13  ;;  %v1017_v23 = vld [vmem:[#allocation2] sm:$0xff]  ;;  %vm1002_vm12 = vcmask 1045509   ;;  %vm1004_vm13 = vcmask 1046534  }
  0xd5   :  { %v1018_v40 = vld [vmem:[#allocation2 + $0x8] sm:$0xf] }
  0xd6   :  { %v209_v63 = vpop.permute.xlu1 %208  ;;  %v205_v0 = vpop.permute.xlu0 %204 }
  0xd7   :  { %1229 = vmatmul.mubr.msk.bf16.gmra.mxu0 %vm1141_vm14, %v1478_v46  ;;  %vm244_vm15 = vcmp.eq.s32.totalorder %v209_v63, %v1569_v43  ;;  %vm243_vm0 = vcmp.eq.s32.totalorder %v205_v0, %v1569_v43  ;;  %vm1006_vm14 = vcmask 1047559  }
  0xd8   :  { %vm1143_vm1 = vmpackc.low %vm244_vm15, %vm243_vm0  ;;  %vm1060_vm15 = vcmask 1043456  }
  0xd9   :  { %1232 = vmatprep.mubr.msk.bf16.mxu0 %vm1143_vm1, %v1478_v46 }
  0xda   :  { %v220_v4 = vpop.permute.xlu1 %219  ;;  %v216_v5 = vpop.permute.xlu0 %215 }
  0xdb   :  { %vm246_vm2 = vcmp.eq.s32.totalorder %v220_v4, %v1569_v43  ;;  %vm245_vm3 = vcmp.eq.s32.totalorder %v216_v5, %v1569_v43 }
  0xdc   :  { %vm1145_vm4 = vmpackc.low %vm246_vm2, %vm245_vm3 }
  0xdf   :  { %1233 = vmatmul.mubr.msk.bf16.gmra.mxu0 %vm1145_vm4, %v1478_v46 }
  0xe1   :  { %747 = vbcast.lane.b32.xlu0 %v745_v14, 256 }
  0xe5   :  { %758 = vbcast.lane.b32.xlu0 %v756_v15, 256 }
  0xe9   :  { %769 = vbcast.lane.b32.xlu0 %v767_v19, 256 }
  0xed   :  { %780 = vbcast.lane.b32.xlu0 %v778_v22, 256 }
  0xf1   :  { %791 = vbcast.lane.b32.xlu0 %v789_v26, 256 }
  0xf5   :  { %835 = vbcast.lane.b32.xlu0 %v833_v27, 256 }
  0xf9   :  { %846 = vbcast.lane.b32.xlu0 %v844_v28, 256 }
  0xfd   :  { %802 = vbcast.lane.b32.xlu0 %v800_v29, 256 }
 0x101   :  { %857 = vbcast.lane.b32.xlu0 %v855_v13, 256 }
 0x105   :  { %813 = vbcast.lane.b32.xlu0 %v811_v3, 256 }
 0x109   :  { %868 = vbcast.lane.b32.xlu0 %v866_v2, 256 }
 0x10d   :  { %824 = vbcast.lane.b32.xlu0 %v822_v18, 256 }
 0x115   :  { %v1022_v20 = vpop.xlane.xlu1 %1021 }
 0x116   :  { %v1027_v25 = vadd.f32 %v1022_v20, %v1017_v23  ;;  %v1634_v23 = vld [vmem:[%s1717_s4] ss:$0 sm:$0xff]  ;;  %s1481_s4 = smov [#allocation11]  }
 0x117   :  { %s1077_s15 = sshll.u32 %s1481_s4, 4  ;;  %s1078_s15 = int_to_ptr.vmem [resolvable:$true] %s1077_s15 }
 0x118   :  { %1030 = vst.msk [vmem:[#allocation2] sm:$0xff] %vm83_vm6, %v1027_v25  ;;  %s1442_s16 = scalar_lea.vmem %s1078_s15, 256  ;;  %p1447_p7 = scmp.lt.s32.totalorder %s1078_s15, %s1078_s15 }
 0x119   :  { %v752_v11 = vpop.permute.xlu1 %751  ;;  %p1443_p6 = scmp.ne.s32.totalorder %s1078_s15, %s1442_s16  ;;  %p1448_p8 = scmp.lt.s32.totalorder %s1442_s16, %s1442_s16 }
 0x11b   :  { %p1449_p9 = por %p1448_p8, %p1447_p7 }
 0x11d   :  { %v763_v15 = vpop.permute.xlu1 %762  ;;  %p1450_p10 = pnand %p1449_p9, %p1443_p6 }
 0x11f   :  { %v1038_v30 = vld [vmem:[#allocation2] sm:$0xff] }
 0x120   :  { %v1040_v31 = vmax.f32 %v1038_v30, 1.0 }
 0x121   :  { %v1625_v17 = vpop.permute.xlu1 %773 }
 0x122   :  { %1306 = vrcp.f32 %v1040_v31 }
 0x125   :  { %v1629_v20 = vpop.permute.xlu1 %784 }
 0x129   :  { %v1638_v26 = vpop.permute.xlu1 %795 }
 0x12d   :  { %v1646_v18 = vpop.permute.xlu1 %839 }
 0x12f   :  { %v1307_v9 = vpop.eup %1306 }
 0x130   :  { %1046 = vperm.xlu1 %1289, %v1307_v9  }
 0x154   :  { %v1026_v1 = vpop.xlane.xlu0 %1025 }
 0x155   :  { %v1028_v24 = vadd.f32 %v1026_v1, %v1018_v40 }
 0x157   :  { %1032 = vst.msk [vmem:[#allocation2 + $0x8] sm:$0xf] %vm85_vm7, %v1028_v24 }
 0x158   :  { %v748_v10 = vpop.permute.xlu0 %747 }
 0x15c   :  { %v759_v14 = vpop.permute.xlu0 %758 }
 0x15e   :  { %v1039_v50 = vld [vmem:[#allocation2 + $0x8] sm:$0xf] }
 0x15f   :  { %v1041_v51 = vmax.f32 %v1039_v50, 1.0 }
 0x160   :  { %v1623_v16 = vpop.permute.xlu0 %769 }
 0x161   :  { %1308 = vrcp.f32 %v1041_v51 }
 0x164   :  { %v1627_v19 = vpop.permute.xlu0 %780 }
 0x168   :  { %v1636_v25 = vpop.permute.xlu0 %791 }
 0x16c   :  { %v1644_v2 = vpop.permute.xlu0 %835 }
 0x16e   :  { %v1309_v62 = vpop.eup %1308 }
 0x16f   :  { %1051 = vperm.xlu0 %1288, %v1309_v62  }
 0x177   :  { %v1214_v32 = vpop.f32.mrf.mxu0 }
 0x179   :  { %v405_v33 = vpop.f32.mrf.mxu0 }
 0x17b   :  { %v1215_v34 = vpop.f32.mrf.mxu0 }
 0x17c   :  { %v501_v36 = vpack.c.bf16 %v1215_v34, %v1214_v32 }
 0x17d   :  { %v408_v35 = vpop.f32.mrf.mxu0 }
 0x17e   :  { %v500_v21 = vpack.c.bf16 %v408_v35, %v405_v33 }
 0x17f   :  { %v1218_v37 = vpop.f32.mrf.mxu0 }
 0x180   :  { %1252 = vmatprep.mubr.bf16.mxu1 %v500_v21 }
 0x181   :  { %v421_v38 = vpop.f32.mrf.mxu0  ;;  %1253 = vmatmul.mubr.bf16.vlgmr.msra.gmra.mxu1 %v501_v36  ;;  %v1651_v36 = vpop.permute.xlu0 %846 }
 0x183   :  { %v1219_v12 = vpop.f32.mrf.mxu0 }
 0x184   :  { %v503_v39 = vpack.c.bf16 %v1219_v12, %v1218_v37  ;;  %v1653_v37 = vpop.permute.xlu1 %850 }
 0x185   :  { %v424_v41 = vpop.f32.mrf.mxu0 }
 0x186   :  { %v502_v42 = vpack.c.bf16 %v424_v41, %v421_v38 }
 0x187   :  { %v1222_v43 = vpop.f32.mrf.mxu0 }
 0x188   :  { %1256 = vmatprep.mubr.bf16.mxu1 %v502_v42 }
 0x189   :  { %v437_v44 = vpop.f32.mrf.mxu0  ;;  %1257 = vmatmul.mubr.bf16.gmra.mxu1 %v503_v39  ;;  %v803_v39 = vpop.permute.xlu0 %802 }
 0x18b   :  { %v1223_v45 = vpop.f32.mrf.mxu0 }
 0x18c   :  { %v505_v48 = vpack.c.bf16 %v1223_v45, %v1222_v43  ;;  %v807_v43 = vpop.permute.xlu1 %806 }
 0x18d   :  { %v440_v46 = vpop.f32.mrf.mxu0 }
 0x18e   :  { %v504_v47 = vpack.c.bf16 %v440_v46, %v437_v44 }
 0x18f   :  { %v1226_v49 = vpop.f32.mrf.mxu0 }
 0x190   :  { %1260 = vmatprep.mubr.bf16.mxu1 %v504_v47 }
 0x191   :  { %v453_v52 = vpop.f32.mrf.mxu0  ;;  %1261 = vmatmul.mubr.bf16.gmra.mxu1 %v505_v48 }
 0x193   :  { %v1227_v53 = vpop.f32.mrf.mxu0 }
 0x194   :  { %v507_v56 = vpack.c.bf16 %v1227_v53, %v1226_v49 }
 0x195   :  { %v456_v54 = vpop.f32.mrf.mxu0 }
 0x196   :  { %v506_v55 = vpack.c.bf16 %v456_v54, %v453_v52 }
 0x197   :  { %v1230_v57 = vpop.f32.mrf.mxu0 }
 0x198   :  { %1264 = vmatprep.mubr.bf16.mxu1 %v506_v55 }
 0x199   :  { %v469_v58 = vpop.f32.mrf.mxu0  ;;  %1265 = vmatmul.mubr.bf16.gmra.mxu1 %v507_v56 }
 0x19b   :  { %v1231_v59 = vpop.f32.mrf.mxu0 }
 0x19c   :  { %v509_v63 = vpack.c.bf16 %v1231_v59, %v1230_v57  ;;  %v1660_v57 = vpop.permute.xlu0 %857 }
 0x19d   :  { %v472_v60 = vpop.f32.mrf.mxu0 }
 0x19e   :  { %v508_v61 = vpack.c.bf16 %v472_v60, %v469_v58  ;;  %v1662_v58 = vpop.permute.xlu1 %861 }
 0x19f   :  { %v1234_v0 = vpop.f32.mrf.mxu0 }
 0x1a0   :  { %1268 = vmatprep.mubr.bf16.mxu1 %v508_v61 }
 0x1a1   :  { %v485_v4 = vpop.f32.mrf.mxu0  ;;  %1269 = vmatmul.mubr.bf16.gmra.mxu1 %v509_v63 }
 0x1a3   :  { %v1235_v5 = vpop.f32.mrf.mxu0 }
 0x1a4   :  { %v511_v8 = vpack.c.bf16 %v1235_v5, %v1234_v0 }
 0x1a5   :  { %v488_v6 = vpop.f32.mrf.mxu0 }
 0x1a6   :  { %v510_v7 = vpack.c.bf16 %v488_v6, %v485_v4 }
 0x1a8   :  { %1272 = vmatprep.mubr.bf16.mxu1 %v510_v7 }
 0x1a9   :  { %1273 = vmatmul.mubr.bf16.gmra.mxu1 %v511_v8 }
 0x241   :  { %v1254_v22 = vpop.f32.mrf.mxu1 }
 0x242   :  { %v626_v29 = vadd.f32 %v1254_v22, %v1634_v23 }
 0x243   :  { %v617_v27 = vpop.f32.mrf.mxu1 }
 0x244   :  { %v618_v28 = vadd.f32 %v1634_v23, %v617_v27 }
 0x245   :  { %v1255_v30 = vpop.f32.mrf.mxu1 }
 0x246   :  { %v629_v13 = vadd.f32 %v1255_v30, %v1634_v23  ;;  %1310 = vtanh.f32 %v618_v28  ;;  %v1671_v28 = vpop.permute.xlu0 %813 }
 0x247   :  { %v620_v31 = vpop.f32.mrf.mxu1 }
 0x248   :  { %1312 = vtanh.f32 %v629_v13  ;;  %v621_v3 = vadd.f32 %v1634_v23, %v620_v31 }
 0x249   :  { %1314 = vtanh.f32 %v626_v29  ;;  %v1258_v9 = vpop.f32.mrf.mxu1  ;;  %v1673_v29 = vpop.permute.xlu1 %817 }
 0x24a   :  { %1316 = vtanh.f32 %v621_v3  ;;  %v642_v32 = vadd.f32 %v1258_v9, %v1634_v23 }
 0x24b   :  { %v633_v33 = vpop.f32.mrf.mxu1 }
 0x24c   :  { %v634_v34 = vadd.f32 %v1634_v23, %v633_v33  ;;  %1318 = vtanh.f32 %v642_v32 }
 0x24d   :  { %v1259_v35 = vpop.f32.mrf.mxu1 }
 0x24e   :  { %v645_v21 = vadd.f32 %v1259_v35, %v1634_v23  ;;  %1320 = vtanh.f32 %v634_v34 }
 0x24f   :  { %v636_v38 = vpop.f32.mrf.mxu1 }
 0x250   :  { %1322 = vtanh.f32 %v645_v21  ;;  %v637_v12 = vadd.f32 %v1634_v23, %v636_v38 }
 0x251   :  { %v1262_v40 = vpop.f32.mrf.mxu1 }
 0x252   :  { %1324 = vtanh.f32 %v637_v12  ;;  %v658_v41 = vadd.f32 %v1262_v40, %v1634_v23 }
 0x253   :  { %v649_v1 = vpop.f32.mrf.mxu1  ;;  %v1311_v42 = vpop.eup %1310 }
 0x254   :  { %v650_v24 = vadd.f32 %v1634_v23, %v649_v1  ;;  %1326 = vtanh.f32 %v658_v41  ;;  %v874_v51 = vmul.f32 %v1311_v42, %v748_v10  ;;  %v1678_v42 = vpop.permute.xlu0 %868 }
 0x255   :  { %v1313_v44 = vpop.eup %1312  ;;  %v1263_v45 = vpop.f32.mrf.mxu1 }
 0x256   :  { %v1315_v46 = vpop.eup %1314  ;;  %v661_v47 = vadd.f32 %v1263_v45, %v1634_v23  ;;  %v877_v49 = vmul.f32 %v1313_v44, %v763_v15  ;;  %1328 = vtanh.f32 %v650_v24  ;;  %v1680_v24 = vpop.permute.xlu1 %872 }
 0x257   :  { %v1317_v48 = vpop.eup %1316  ;;  %v652_v50 = vpop.f32.mrf.mxu1  ;;  %v876_v54 = vmul.f32 %v1315_v46, %v759_v14 }
 0x258   :  { %v875_v52 = vmul.f32 %v1317_v48, %v752_v11  ;;  %1330 = vtanh.f32 %v661_v47  ;;  %v653_v53 = vadd.f32 %v1634_v23, %v652_v50 }
 0x259   :  { %v1266_v55 = vpop.f32.mrf.mxu1  ;;  %v1319_v59 = vpop.eup %1318  ;;  %v905_v60 = vadd.f32 %v877_v49, %v876_v54 }
 0x25a   :  { %v898_v56 = vadd.f32 %v875_v52, %v874_v51  ;;  %1332 = vtanh.f32 %v653_v53  ;;  %v674_v61 = vadd.f32 %v1266_v55, %v1634_v23  ;;  %v880_v11 = vmul.f32 %v1319_v59, %v1627_v19 }
 0x25b   :  { %v665_v62 = vpop.f32.mrf.mxu1  ;;  %v1321_v63 = vpop.eup %1320  ;;  %v906_v10 = vrot.slane %v905_v60, 4 }
 0x25c   :  { %v666_v0 = vadd.f32 %v1634_v23, %v665_v62  ;;  %v899_v5 = vrot.slane %v898_v56, 4  ;;  %1334 = vtanh.f32 %v674_v61  ;;  %v878_v22 = vmul.f32 %v1321_v63, %v1623_v16  ;;  %v825_v63 = vpop.permute.xlu0 %824 }
 0x25d   :  { %v1323_v4 = vpop.eup %1322  ;;  %v1267_v6 = vpop.f32.mrf.mxu1  ;;  %v907_v9 = vadd.f32 %v906_v10, %v905_v60 }
 0x25e   :  { %v881_v7 = vmul.f32 %v1323_v4, %v1629_v20  ;;  %v677_v14 = vadd.f32 %v1267_v6, %v1634_v23  ;;  %1336 = vtanh.f32 %v666_v0  ;;  %v900_v30 = vadd.f32 %v899_v5, %v898_v56 }
 0x25f   :  { %v1325_v8 = vpop.eup %1324  ;;  %v668_v15 = vpop.f32.mrf.mxu1  ;;  %v908_v45 = vrot.slane %v907_v9, 2 }
 0x260   :  { %v879_v27 = vmul.f32 %v1325_v8, %v1625_v17  ;;  %v919_v13 = vadd.f32 %v881_v7, %v880_v11  ;;  %1338 = vtanh.f32 %v677_v14  ;;  %v669_v20 = vadd.f32 %v1634_v23, %v668_v15 }
 0x261   :  { %v1270_v31 = vpop.f32.mrf.mxu1  ;;  %v1327_v3 = vpop.eup %1326  ;;  %v901_v35 = vrot.slane %v900_v30, 2  ;;  %v909_v56 = vadd.f32 %v908_v45, %v907_v9 }
 0x262   :  { %v912_v19 = vadd.f32 %v879_v27, %v878_v22  ;;  %1340 = vtanh.f32 %v669_v20  ;;  %v690_v32 = vadd.f32 %v1270_v31, %v1634_v23  ;;  %v920_v21 = vrot.slane %v919_v13, 4 }
 0x263   :  { %v681_v16 = vpop.f32.mrf.mxu1  ;;  %v1329_v33 = vpop.eup %1328  ;;  %v884_v41 = vmul.f32 %v1327_v3, %v803_v39  ;;  %v902_v52 = vadd.f32 %v901_v35, %v900_v30  ;;  %v910_v15 = vrot.slane %v909_v56, 1 }
 0x264   :  { %v913_v17 = vrot.slane %v912_v19, 4  ;;  %v682_v38 = vadd.f32 %v1634_v23, %v681_v16  ;;  %v882_v46 = vmul.f32 %v1329_v33, %v1636_v25  ;;  %1342 = vtanh.f32 %v690_v32 }
 0x265   :  { %v1331_v34 = vpop.eup %1330  ;;  %v1271_v12 = vpop.f32.mrf.mxu1  ;;  %v921_v39 = vadd.f32 %v920_v21, %v919_v13  ;;  %v903_v4 = vrot.slane %v902_v52, 1 }
 0x266   :  { %v914_v40 = vadd.f32 %v913_v17, %v912_v19  ;;  %v885_v1 = vmul.f32 %v1331_v34, %v807_v43  ;;  %v693_v47 = vadd.f32 %v1271_v12, %v1634_v23  ;;  %1344 = vtanh.f32 %v682_v38 }
 0x267   :  { %v1333_v44 = vpop.eup %1332  ;;  %v684_v48 = vpop.f32.mrf.mxu1  ;;  %v922_v5 = vrot.slane %v921_v39, 2  ;;  %v904_v16 = vadd.f32 %v903_v4, %v902_v52  ;;  %v911_v12 = vadd.f32 %v910_v15, %v909_v56 }
 0x268   :  { %v915_v49 = vrot.slane %v914_v40, 2  ;;  %v883_v50 = vmul.f32 %v1333_v44, %v1638_v26  ;;  %v933_v51 = vadd.f32 %v885_v1, %v884_v41  ;;  %1346 = vtanh.f32 %v693_v47  ;;  %v829_v26 = vpop.permute.xlu1 %828 }
 0x269   :  { %v685_v43 = vadd.f32 %v1634_v23, %v684_v48  ;;  %v1274_v53 = vpop.f32.mrf.mxu1  ;;  %v1335_v60 = vpop.eup %1334  ;;  %v923_v33 = vadd.f32 %v922_v5, %v921_v39 }
 0x26a   :  { %v926_v54 = vadd.f32 %v883_v50, %v882_v46  ;;  %v934_v55 = vrot.slane %v933_v51, 4  ;;  %v706_v25 = vadd.f32 %v1274_v53, %v1634_v23  ;;  %v916_v61 = vadd.f32 %v915_v49, %v914_v40 }
 0x26b   :  { %1348 = vtanh.f32 %v685_v43  ;;  %v697_v59 = vpop.f32.mrf.mxu1  ;;  %v1337_v0 = vpop.eup %1336  ;;  %v888_v22 = vmul.f32 %v1335_v60, %v825_v63  ;;  %v924_v45 = vrot.slane %v923_v33, 1 }
 0x26c   :  { %v927_v62 = vrot.slane %v926_v54, 4  ;;  %v698_v6 = vadd.f32 %v1634_v23, %v697_v59  ;;  %v935_v11 = vadd.f32 %v934_v55, %v933_v51  ;;  %1350 = vtanh.f32 %v706_v25 }
 0x26d   :  { %v1275_v7 = vpop.f32.mrf.mxu1  ;;  %v1339_v8 = vpop.eup %1338  ;;  %v917_v20 = vrot.slane %v916_v61, 1  ;;  %v886_v19 = vmul.f32 %v1337_v0, %v1671_v28  ;;  %v925_v56 = vadd.f32 %v924_v45, %v923_v33 }
 0x26e   :  { %v928_v10 = vadd.f32 %v927_v62, %v926_v54  ;;  %v709_v14 = vadd.f32 %v1275_v7, %v1634_v23  ;;  %v889_v27 = vmul.f32 %v1339_v8, %v829_v26  ;;  %v936_v34 = vrot.slane %v935_v11, 2 }
 0x26f   :  { %v700_v30 = vpop.f32.mrf.mxu1  ;;  %v1341_v13 = vpop.eup %1340  ;;  %v918_v40 = vadd.f32 %v917_v20, %v916_v61 }
 0x270   :  { %v929_v31 = vrot.slane %v928_v10, 2  ;;  %1352 = vtanh.f32 %v709_v14  ;;  %v887_v3 = vmul.f32 %v1341_v13, %v1673_v29  ;;  %v947_v9 = vadd.f32 %v889_v27, %v888_v22 }
 0x271   :  { %1354 = vtanh.f32 %v698_v6  ;;  %v701_v32 = vadd.f32 %v1634_v23, %v700_v30  ;;  %v1343_v38 = vpop.eup %1342  ;;  %v937_v46 = vadd.f32 %v936_v34, %v935_v11  ;;  %v995_v23 = vsel %vm994_vm8, %v911_v12, %v904_v16 }
 0x272   :  { %v930_v17 = vadd.f32 %v929_v31, %v928_v10  ;;  %v940_v35 = vadd.f32 %v887_v3, %v886_v19  ;;  %v948_v21 = vrot.slane %v947_v9, 4  ;;  %v892_v47 = vmul.f32 %v1343_v38, %v1651_v36 }
 0x273   :  { %1356 = vtanh.f32 %v701_v32  ;;  %v1345_v41 = vpop.eup %1344  ;;  %v997_v52 = vsel %vm996_vm9, %v918_v40, %v995_v23  ;;  %v938_v25 = vrot.slane %v937_v46, 1 }
 0x274   :  { %v931_v28 = vrot.slane %v930_v17, 1  ;;  %v941_v1 = vrot.slane %v940_v35, 4  ;;  %v949_v29 = vadd.f32 %v948_v21, %v947_v9  ;;  %v890_v39 = vmul.f32 %v1345_v41, %v1644_v2 }
 0x275   :  { %v1347_v44 = vpop.eup %1346  ;;  %v999_v62 = vsel %vm998_vm10, %v925_v56, %v997_v52  ;;  %v939_v6 = vadd.f32 %v938_v25, %v937_v46 }
 0x276   :  { %v942_v48 = vadd.f32 %v941_v1, %v940_v35  ;;  %v893_v49 = vmul.f32 %v1347_v44, %v1653_v37  ;;  %v950_v50 = vrot.slane %v949_v29, 2  ;;  %v932_v43 = vadd.f32 %v931_v28, %v930_v17 }
 0x278   :  { %v1349_v51 = vpop.eup %1348  ;;  %v943_v53 = vrot.slane %v942_v48, 2  ;;  %v961_v54 = vadd.f32 %v893_v49, %v892_v47  ;;  %v951_v59 = vadd.f32 %v950_v50, %v949_v29  ;;  %v1001_v0 = vsel %vm1000_vm11, %v932_v43, %v999_v62  ;;  %v741_v47 = vld [vmem:[#allocation11 + $0x8] sm:$0xf] }
 0x279   :  { %v891_v55 = vmul.f32 %v1349_v51, %v1646_v18  ;;  %v1351_v36 = vpop.eup %1350  ;;  %v1003_v15 = vsel %vm1002_vm12, %v939_v6, %v1001_v0  ;;  %v1052_v51 = vpop.permute.xlu0 %1051 }
 0x27a   :  { %v944_v60 = vadd.f32 %v943_v53, %v942_v48  ;;  %v962_v61 = vrot.slane %v961_v54, 4  ;;  %v952_v63 = vrot.slane %v951_v59, 1  ;;  %v896_v7 = vmul.f32 %v1351_v36, %v1678_v42  ;;  %v1047_v42 = vpop.permute.xlu1 %1046 }
 0x27b   :  { %v954_v37 = vadd.f32 %v891_v55, %v890_v39 }
 0x27c   :  { %v945_v2 = vrot.slane %v944_v60, 1  ;;  %v963_v18 = vadd.f32 %v962_v61, %v961_v54  ;;  %v953_v22 = vadd.f32 %v952_v63, %v951_v59 }
 0x27d   :  { %v1353_v26 = vpop.eup %1352  ;;  %v955_v4 = vrot.slane %v954_v37, 4 }
 0x27e   :  { %v1355_v5 = vpop.eup %1354  ;;  %v897_v8 = vmul.f32 %v1353_v26, %v1680_v24  ;;  %v946_v10 = vadd.f32 %v945_v2, %v944_v60  ;;  %v964_v19 = vrot.slane %v963_v18, 2 }
 0x27f   :  { %v956_v11 = vadd.f32 %v955_v4, %v954_v37  ;;  %v894_v20 = vmul.f32 %v1355_v5, %v1660_v57 }
 0x280   :  { %v1357_v14 = vpop.eup %1356  ;;  %v975_v27 = vadd.f32 %v897_v8, %v896_v7  ;;  %v1005_v30 = vsel %vm1004_vm13, %v946_v10, %v1003_v15  ;;  %v965_v34 = vadd.f32 %v964_v19, %v963_v18 }
 0x281   :  { %v957_v13 = vrot.slane %v956_v11, 2  ;;  %v895_v31 = vmul.f32 %v1357_v14, %v1662_v58  ;;  %v1007_v3 = vsel %vm1006_vm14, %v953_v22, %v1005_v30 }
 0x282   :  { %v976_v9 = vrot.slane %v975_v27, 4  ;;  %v1054_v17 = vmul.f32 %v1047_v42, %v1007_v3  ;;  %v966_v57 = vrot.slane %v965_v34, 1 }
 0x283   :  { %v968_v32 = vadd.f32 %v895_v31, %v894_v20  ;;  %v958_v24 = vadd.f32 %v957_v13, %v956_v11 }
 0x284   :  { %v977_v16 = vadd.f32 %v976_v9, %v975_v27  ;;  %v1056_v38 = vmul.f32 %v1054_v17, %v1054_v17  ;;  %v967_v44 = vadd.f32 %v966_v57, %v965_v34 }
 0x285   :  { %v969_v33 = vrot.slane %v968_v32, 4  ;;  %v959_v12 = vrot.slane %v958_v24, 1 }
 0x286   :  { %v978_v35 = vrot.slane %v977_v16, 2  ;;  %1058 = vadd.xlane.f32.xlu1 %v1056_v38 }
 0x287   :  { %v970_v21 = vadd.f32 %v969_v33, %v968_v32  ;;  %v960_v58 = vadd.f32 %v959_v12, %v958_v24 }
 0x288   :  { %v979_v40 = vadd.f32 %v978_v35, %v977_v16 }
 0x289   :  { %v971_v41 = vrot.slane %v970_v21, 2  ;;  %v1008_v46 = vsel %vm994_vm8, %v967_v44, %v960_v58 }
 0x28a   :  { %v980_v1 = vrot.slane %v979_v40, 1 }
 0x28b   :  { %v972_v28 = vadd.f32 %v971_v41, %v970_v21 }
 0x28c   :  { %v981_v23 = vadd.f32 %v980_v1, %v979_v40 }
 0x28d   :  { %v973_v29 = vrot.slane %v972_v28, 1 }
 0x28f   :  { %v974_v45 = vadd.f32 %v973_v29, %v972_v28 }
 0x291   :  { %v1009_v48 = vsel %vm996_vm9, %v974_v45, %v1008_v46 }
 0x292   :  { %v1010_v49 = vsel %vm998_vm10, %v981_v23, %v1009_v48 }
 0x293   :  { %v1014_v50 = vadd.f32 %v1010_v49, %v741_v47 }
 0x295   :  { %1016 = vst [vmem:[#allocation11 + $0x8] sm:$0xf] %v1014_v50 }
 0x29c   :  { %v1037_v52 = vld [vmem:[#allocation11 + $0x8] sm:$0xf] }
 0x29d   :  { %v1055_v39 = vmul.f32 %v1052_v51, %v1037_v52 }
 0x29f   :  { %v1057_v43 = vmul.f32 %v1055_v39, %v1055_v39 }
 0x2a1   :  { %v1061_v53 = vsel %vm1060_vm15, %v1057_v43, 0.0 }
 0x2a2   :  { %1062 = vadd.xlane.f32.xlu0 %v1061_v53 }
 0x30f   :  { %v1059_v54 = vpop.xlane.xlu1 %1058 }
 0x310   :  { %v1064_v55 = vmax.f32 %v1059_v54, 1e-24 }
 0x312   :  { %1358 = vrsqrt.f32 %v1064_v55 }
 0x31f   :  { %v1359_v56 = vpop.eup %1358 }
 0x320   :  { %v1068_v25 = vmul.f32 %v1359_v56, %v1054_v17 }
 0x322   :  { %1070 = vst [vmem:[#allocation11] sm:$0xff] %v1068_v25 }
 0x32b   :  { %v1063_v59 = vpop.xlane.xlu0 %1062 }
 0x32c   :  { %v1065_v36 = vmax.f32 %v1063_v59, 1e-24 }
 0x32e   :  { %1360 = vrsqrt.f32 %v1065_v36 }
 0x33b   :  { %v1361_v60 = vpop.eup %1360 }
 0x33c   :  { %v1069_v61 = vmul.f32 %v1361_v60, %v1055_v39 }
 0x33e   :  { %1071 = vst [vmem:[#allocation11 + $0x8] sm:$0xf] %v1069_v61 }
 0x33f   :  { %1453 = shalt.err (!%p1450_p10)
}
 0x340   :  { %1083 = dma.vmem_to_hbm [thread:$0]  %s1078_s15, 256, %s1718_s5, [#allocation5], %s1472_s23, %s1472_s23, %s1473_s24  }
 0x341   :  { %1468 = dma.done.wait [#allocation5], 256  }
 0x342   :  { %1469 = vsyncadd [#allocation5], 4294967040 }
 0x343   :  { %1087 = vsyncpa [#allocation4], 1 }
 0x344   :  { %1088 = vsyncpa [#allocation7], 1 }
 0x345   :  { %1089 = vsyncpa [#allocation10], 1 }
 0x346   :  { %1090 = vsyncpa [#allocation5], 1 }

</bundles_post_ra>
